<compile_context>
chip_gen: v5e
topology: v5e:2x2
jax: 0.10.0
libtpu: 0.0.40
codegen_flags: <defaults>
</compile_context>

<pallas_src>
import numpy as np
import jax
import jax.numpy as jnp
from jax import lax
from jax.experimental import pallas as pl
from jax.experimental.pallas import tpu as pltpu


def merger_kernel(x_ref, r_ref, f_ref, wt_ref, b_ref, o_ref):
    # x_ref : (TB, H)     query rows (middle dim of size 1 squeezed in wrapper)
    # r_ref : (TB, K, H)  retrieved items
    # f_ref : (TB, K, H)  future-item embeddings
    # wt_ref: (H, H)      dense weight, pre-transposed (W.T), resident across grid
    # b_ref : (1, H)      dense bias, resident across grid
    # o_ref : (TB, H)     output
    x = x_ref[...].astype(jnp.float32)
    r = r_ref[...].astype(jnp.float32)
    f = f_ref[...].astype(jnp.float32)

    # L2 normalization along hidden (matches torch.norm(dim=-1)).  rsqrt runs on
    # the EUP slot and replaces the divide with a multiply on the VPU.
    x_n = x * lax.rsqrt(jnp.sum(x * x, axis=-1, keepdims=True))
    r_n = r * lax.rsqrt(jnp.sum(r * r, axis=-1, keepdims=True))

    # similarity (TB, K): broadcast-multiply + lane reduce.  Avoids materializing
    # r_n.T (an XLU transpose per step) for a tiny result and keeps the MXU free.
    sim = jnp.sum(x_n[:, None, :] * r_n, axis=-1)

    # weighted_sum (TB, H): K is small, so broadcast-multiply + sublane reduce is
    # cheaper than K tiny batched matmuls.
    ws = jnp.sum(sim[:, :, None] * f, axis=1)

    # dropout (eval mode) is identity.
    # dense: y = ws @ W.T + b  -- the one real MXU matmul, now MXU-shaped.
    out = jnp.dot(ws, wt_ref[...].astype(jnp.float32),
                  preferred_element_type=jnp.float32)
    out = out + b_ref[...].astype(jnp.float32)
    o_ref[...] = out.astype(o_ref.dtype)


def _round_up(x, m):
    return ((x + m - 1) // m) * m


def _pick_batch_tile(B, K, H, stream_itemsize):
    """Largest MXU-friendly batch tile whose (double-buffered) blocks fit a
    conservative VMEM budget (headroom for v7x's 64 MiB per TensorCore)."""
    bp8 = _round_up(B, 8)
    if bp8 >= 256:
        tb = 256            # 256-aligned M for the v6e / v7x 256x256 MXU
    elif bp8 >= 128:
        tb = 128            # 128-aligned M for the v5e 128x128 MXU
    else:
        tb = bp8            # tiny batch: single grid step, no pipelining overhead

    budget = 48 * 1024 * 1024

    def vmem_need(t):
        stream = 2 * (t * H + 2 * t * K * H) * stream_itemsize  # x, r, f (double-buffered)
        fixed = 2 * (H * H + H) * 4                             # W.T + bias (conservative)
        out = 2 * t * H * 4
        return stream + fixed + out

    while tb > 8 and vmem_need(tb) > budget:
        tb = max(8, _round_up(tb // 2, 8))
    return tb, vmem_need(tb)


def future_item_merger(input_tensor, retrieval_tensor, future_item_embedding,
                       W, b, *, cast_streams_to_bf16=False):
    """input_tensor: (B,1,H), retrieval/future: (B,K,H), W: (H,H) PyTorch Linear
    weight, b: (H,).  Returns (B, H) float32."""
    B, Q, H = input_tensor.shape
    assert Q == 1, "middle dim must be 1 (the .view in the reference requires it)"
    K = retrieval_tensor.shape[1]

    x2 = input_tensor.reshape(B, H)
    r = retrieval_tensor
    f = future_item_embedding

    if cast_streams_to_bf16:
        # Halves HBM traffic on the streaming inputs; math stays in f32 in-kernel.
        x2 = x2.astype(jnp.bfloat16)
        r = r.astype(jnp.bfloat16)
        f = f.astype(jnp.bfloat16)

    stream_itemsize = jnp.dtype(x2.dtype).itemsize
    TB, vmem_need = _pick_batch_tile(B, K, H, stream_itemsize)

    # Pad batch to a multiple of the tile (padded rows are dropped at the end;
    # any NaN they produce in the normalization never touches valid rows).
    Bp = _round_up(B, TB)
    if Bp != B:
        pad = Bp - B
        x2 = jnp.pad(x2, ((0, pad), (0, 0)))
        r = jnp.pad(r, ((0, pad), (0, 0), (0, 0)))
        f = jnp.pad(f, ((0, pad), (0, 0), (0, 0)))

    wt = W.T.astype(jnp.float32)          # (H_in, H_out)
    b2 = b.reshape(1, H).astype(jnp.float32)

    vmem_limit = None
    if vmem_need > 24 * 1024 * 1024:
        vmem_limit = min(int(vmem_need * 1.25), 100 * 1024 * 1024)

    out = pl.pallas_call(
        merger_kernel,
        out_shape=jax.ShapeDtypeStruct((Bp, H), jnp.float32),
        grid_spec=pltpu.PrefetchScalarGridSpec(
            num_scalar_prefetch=0,
            grid=(Bp // TB,),
            in_specs=[
                pl.BlockSpec((TB, H), lambda i: (i, 0)),        # x  -> (TB, H)
                pl.BlockSpec((TB, K, H), lambda i: (i, 0, 0)),  # retrieval
                pl.BlockSpec((TB, K, H), lambda i: (i, 0, 0)),  # future
                # Constant index_map: W.T / bias are fetched once and stay
                # resident across the grid (no per-step re-DMA).
                pl.BlockSpec((H, H), lambda i: (0, 0)),
                pl.BlockSpec((1, H), lambda i: (0, 0)),
            ],
            out_specs=pl.BlockSpec((TB, H), lambda i: (i, 0)),
        ),
        compiler_params=pltpu.CompilerParams(
            dimension_semantics=("parallel",),   # v7x: shard batch tiles over 2 TCs
            vmem_limit_bytes=vmem_limit,
        ),
    )(x2, r, f, wt, b2)

    return out[:B]


def ref_forward(x, r, f, W, b):
    xn = x / jnp.linalg.norm(x, axis=-1, keepdims=True)
    rn = r / jnp.linalg.norm(r, axis=-1, keepdims=True)
    sim = jnp.einsum("bqh,bkh->bqk", xn, rn)
    ws = jnp.einsum("bqk,bkh->bqh", sim, f).reshape(x.shape[0], -1)
    return ws @ W.T + b


if __name__ == "__main__":
    key = jax.random.PRNGKey(0)

    # ---- case 1: module's small shape (B=2, K=8, H=32), f32, single grid step ----
    B, K, H = 2, 8, 32
    kx, kr, kf, kw, kb, key = jax.random.split(key, 6)
    x = jax.random.normal(kx, (B, 1, H), dtype=jnp.float32)
    r = jax.random.normal(kr, (B, K, H), dtype=jnp.float32)
    f = jax.random.normal(kf, (B, K, H), dtype=jnp.float32)
    bound = 1.0 / float(np.sqrt(H))
    W = jax.random.uniform(kw, (H, H), jnp.float32, -bound, bound)
    b = jax.random.uniform(kb, (H,), jnp.float32, -bound, bound)

    out = jax.block_until_ready(future_item_merger(x, r, f, W, b))
    ref = ref_forward(x, r, f, W, b)
    np.testing.assert_allclose(np.asarray(out), np.asarray(ref), rtol=1e-4, atol=1e-4)

    # ---- case 2: batch-tiled path (B not a multiple of the tile), f32 ----
    B2, K2, H2 = 130, 4, 128
    kx, kr, kf, kw, kb, key = jax.random.split(key, 6)
    x2 = jax.random.normal(kx, (B2, 1, H2), dtype=jnp.float32)
    r2 = jax.random.normal(kr, (B2, K2, H2), dtype=jnp.float32)
    f2 = jax.random.normal(kf, (B2, K2, H2), dtype=jnp.float32)
    bound2 = 1.0 / float(np.sqrt(H2))
    W2 = jax.random.uniform(kw, (H2, H2), jnp.float32, -bound2, bound2)
    b2 = jax.random.uniform(kb, (H2,), jnp.float32, -bound2, bound2)

    out2 = jax.block_until_ready(future_item_merger(x2, r2, f2, W2, b2))
    ref2 = ref_forward(x2, r2, f2, W2, b2)
    np.testing.assert_allclose(np.asarray(out2), np.asarray(ref2), rtol=1e-4, atol=1e-4)

    # ---- case 3: bf16 streaming inputs (HBM-bandwidth option), f32 accumulation ----
    out3 = jax.block_until_ready(
        future_item_merger(x2, r2, f2, W2, b2, cast_streams_to_bf16=True))
    ref3 = ref_forward(x2.astype(jnp.bfloat16).astype(jnp.float32),
                       r2.astype(jnp.bfloat16).astype(jnp.float32),
                       f2.astype(jnp.bfloat16).astype(jnp.float32), W2, b2)
    np.testing.assert_allclose(np.asarray(out3), np.asarray(ref3), rtol=2e-2, atol=2e-2)

    print("KERNEL_OK")
</pallas_src>

<mosaic_0001>
module attributes {stable_mosaic.version = 11 : i64} {
  func.func @merger_kernel(%arg0: i32, %arg1: memref<8x32xf32, #tpu.memory_space<vmem>>, %arg2: memref<8x8x32xf32, #tpu.memory_space<vmem>>, %arg3: memref<8x8x32xf32, #tpu.memory_space<vmem>>, %arg4: memref<32x32xf32, #tpu.memory_space<vmem>>, %arg5: memref<1x32xf32, #tpu.memory_space<vmem>>, %arg6: memref<8x32xf32, #tpu.memory_space<vmem>>) attributes {dimension_semantics = [#tpu.dimension_semantics<parallel>], iteration_bounds = array<i64: 1>, scalar_prefetch = 0 : i64, scratch_operands = 0 : i64, tpu.core_type = #tpu.core_type<tc>, window_params = [{transform_indices = @transform_0, window_bounds = array<i64: 8, 32>}, {transform_indices = @transform_1, window_bounds = array<i64: 8, 8, 32>}, {transform_indices = @transform_2, window_bounds = array<i64: 8, 8, 32>}, {pipeline_mode = #tpu.pipeline_mode<synchronous>, transform_indices = @transform_3, window_bounds = array<i64: 32, 32>}, {pipeline_mode = #tpu.pipeline_mode<synchronous>, transform_indices = @transform_4, window_bounds = array<i64: 1, 32>}, {transform_indices = @transform_5, window_bounds = array<i64: 8, 32>}]} {
    %c0 = arith.constant 0 : index
    %c0_0 = arith.constant 0 : index
    %0 = vector.load %arg1[%c0, %c0_0] : memref<8x32xf32, #tpu.memory_space<vmem>>, vector<8x32xf32>
    %c0_1 = arith.constant 0 : index
    %c0_2 = arith.constant 0 : index
    %c0_3 = arith.constant 0 : index
    %1 = vector.load %arg2[%c0_1, %c0_2, %c0_3] : memref<8x8x32xf32, #tpu.memory_space<vmem>>, vector<8x8x32xf32>
    %c0_4 = arith.constant 0 : index
    %c0_5 = arith.constant 0 : index
    %c0_6 = arith.constant 0 : index
    %2 = vector.load %arg3[%c0_4, %c0_5, %c0_6] : memref<8x8x32xf32, #tpu.memory_space<vmem>>, vector<8x8x32xf32>
    %3 = arith.mulf %0, %0 : vector<8x32xf32>
    %cst = arith.constant dense<0.000000e+00> : vector<8xf32>
    %4 = vector.multi_reduction <add>, %3, %cst [1] : vector<8x32xf32> to vector<8xf32>
    %5 = vector.shape_cast %4 : vector<8xf32> to vector<8x1xf32>
    %6 = math.rsqrt %5 : vector<8x1xf32>
    %7 = vector.broadcast %6 : vector<8x1xf32> to vector<8x32xf32>
    %8 = arith.mulf %0, %7 : vector<8x32xf32>
    %9 = arith.mulf %1, %1 : vector<8x8x32xf32>
    %cst_7 = arith.constant dense<0.000000e+00> : vector<8x8xf32>
    %10 = vector.multi_reduction <add>, %9, %cst_7 [2] : vector<8x8x32xf32> to vector<8x8xf32>
    %11 = vector.shape_cast %10 : vector<8x8xf32> to vector<8x8x1xf32>
    %12 = math.rsqrt %11 : vector<8x8x1xf32>
    %13 = vector.broadcast %12 : vector<8x8x1xf32> to vector<8x8x32xf32>
    %14 = arith.mulf %1, %13 : vector<8x8x32xf32>
    %15 = vector.shape_cast %8 : vector<8x32xf32> to vector<8x1x32xf32>
    %16 = vector.broadcast %15 : vector<8x1x32xf32> to vector<8x8x32xf32>
    %17 = arith.mulf %16, %14 : vector<8x8x32xf32>
    %cst_8 = arith.constant dense<0.000000e+00> : vector<8x8xf32>
    %18 = vector.multi_reduction <add>, %17, %cst_8 [2] : vector<8x8x32xf32> to vector<8x8xf32>
    %19 = vector.shape_cast %18 : vector<8x8xf32> to vector<8x8x1xf32>
    %20 = vector.broadcast %19 : vector<8x8x1xf32> to vector<8x8x32xf32>
    %21 = arith.mulf %20, %2 : vector<8x8x32xf32>
    %cst_9 = arith.constant dense<0.000000e+00> : vector<8x32xf32>
    %22 = vector.multi_reduction <add>, %21, %cst_9 [1] : vector<8x8x32xf32> to vector<8x32xf32>
    %c0_10 = arith.constant 0 : index
    %c0_11 = arith.constant 0 : index
    %23 = vector.load %arg4[%c0_10, %c0_11] : memref<32x32xf32, #tpu.memory_space<vmem>>, vector<32x32xf32>
    %cst_12 = arith.constant dense<0.000000e+00> : vector<8x32xf32>
    %24 = tpu.matmul %22, %23, %cst_12 {dimension_numbers = #tpu.dot_dimension_numbers<[1], [0], [0], [1], [0, 0, 1, 1], [], []>} : vector<8x32xf32>, vector<32x32xf32>, vector<8x32xf32> -> vector<8x32xf32>
    %c0_13 = arith.constant 0 : index
    %c0_14 = arith.constant 0 : index
    %25 = vector.load %arg5[%c0_13, %c0_14] : memref<1x32xf32, #tpu.memory_space<vmem>>, vector<1x32xf32>
    %26 = vector.broadcast %25 : vector<1x32xf32> to vector<8x32xf32>
    %27 = arith.addf %24, %26 : vector<8x32xf32>
    %c0_15 = arith.constant 0 : index
    %c0_16 = arith.constant 0 : index
    %28 = vector.load %arg6[%c0_15, %c0_16] : memref<8x32xf32, #tpu.memory_space<vmem>>, vector<8x32xf32>
    tpu.vector_store %arg6[%c0_15, %c0_16], %27 {strides = array<i32>} : memref<8x32xf32, #tpu.memory_space<vmem>>, vector<8x32xf32>,
    return
  }
  func.func @transform_0(%arg0: i32) -> (i32, i32) {
    %c0_i32 = arith.constant 0 : i32
    %c0_i32_0 = arith.constant 0 : i32
    return %arg0, %c0_i32 : i32, i32
  }
  func.func @transform_1(%arg0: i32) -> (i32, i32, i32) {
    %c0_i32 = arith.constant 0 : i32
    %c0_i32_0 = arith.constant 0 : i32
    %c0_i32_1 = arith.constant 0 : i32
    return %arg0, %c0_i32, %c0_i32_0 : i32, i32, i32
  }
  func.func @transform_2(%arg0: i32) -> (i32, i32, i32) {
    %c0_i32 = arith.constant 0 : i32
    %c0_i32_0 = arith.constant 0 : i32
    %c0_i32_1 = arith.constant 0 : i32
    return %arg0, %c0_i32, %c0_i32_0 : i32, i32, i32
  }
  func.func @transform_3(%arg0: i32) -> (i32, i32) {
    %c0_i32 = arith.constant 0 : i32
    %c0_i32_0 = arith.constant 0 : i32
    %c0_i32_1 = arith.constant 0 : i32
    return %c0_i32, %c0_i32_0 : i32, i32
  }
  func.func @transform_4(%arg0: i32) -> (i32, i32) {
    %c0_i32 = arith.constant 0 : i32
    %c0_i32_0 = arith.constant 0 : i32
    %c0_i32_1 = arith.constant 0 : i32
    return %c0_i32, %c0_i32_0 : i32, i32
  }
  func.func @transform_5(%arg0: i32) -> (i32, i32) {
    %c0_i32 = arith.constant 0 : i32
    %c0_i32_0 = arith.constant 0 : i32
    return %arg0, %c0_i32 : i32, i32
  }
}

</mosaic_0001>

<bundles_post_ra>
// kernel: tpu_custom_call.1
= control target key start
LH: loop header
LB: loop body
LE: loop exit
PB: predicated region body
PF: predicated region fallthrough
CT: control target
= control target key end

     0   :  { %10 = vsyncpa [#allocation3], 0  ;;  %s855_s0 = inlined_call_operand.hbm [shape: f32[8,32], index: 0, kind: input, shape index: {}]   ;;  %s856_s1 = inlined_call_operand.hbm [shape: f32[8,8,32], index: 1, kind: input, shape index: {}]   ;;  %s857_s2 = inlined_call_operand.hbm [shape: f32[8,8,32], index: 2, kind: input, shape index: {}]   ;;  %s858_s3 = inlined_call_operand.hbm [shape: f32[32,32], index: 3, kind: input, shape index: {}]   ;;  %s859_s4 = inlined_call_operand.vmem [shape: f32[1,32], index: 4, kind: input, shape index: {}]   ;;  %s860_s5 = inlined_call_operand.hbm [shape: f32[8,32], index: 5, kind: output, shape index: {}]  }
   0x1   :  { %11 = vsyncpa [#allocation6], 0 }
   0x2   :  { %12 = vsyncpa [#allocation9], 0  ;;  %s29_s20 = sshll.u32 %s856_s1, 4  ;;  %s30_s20 = int_to_ptr.hbm [resolvable:$true] %s29_s20 }
   0x3   :  { %13 = vsyncpa [#allocation4], 0  ;;  %s582_s21 = smov [#allocation5]   ;;  %s19_s25 = sshll.u32 %s855_s0, 4  ;;  %s20_s25 = int_to_ptr.hbm [resolvable:$true] %s19_s25 }
   0x4   :  { %s31_s22 = sshll.u32 %s582_s21, 4  ;;  %s583_s26 = smov 128   ;;  %s32_s22 = int_to_ptr.vmem [resolvable:$true] %s31_s22 }
   0x5   :  { %s584_s27 = smov 8   ;;  %s585_s28 = smov [#allocation2]  }
   0x6   :  { %37 = dma.hbm_to_vmem [thread:$0]  %s30_s20, 1024, %s32_s22, [#allocation6], %s583_s26, %s583_s26, %s584_s27  }
   0x7   :  { %s21_s29 = sshll.u32 %s585_s28, 4  ;;  %s42_s7 = sshll.u32 %s857_s2, 4  ;;  %s22_s29 = int_to_ptr.vmem [resolvable:$true] %s21_s29  ;;  %s43_s7 = int_to_ptr.hbm [resolvable:$true] %s42_s7 }
   0x8   :  { %24 = dma.hbm_to_vmem [thread:$0]  %s20_s25, 128, %s22_s29, [#allocation3]  }
   0x9   :  { %s55_s9 = sshll.u32 %s858_s3, 4  ;;  %s586_s10 = smov [#allocation7]   ;;  %s56_s9 = int_to_ptr.hbm [resolvable:$true] %s55_s9 }
   0xa   :  { %s44_s11 = sshll.u32 %s586_s10, 4  ;;  %s587_s0 = smov [#allocation8]   ;;  %s45_s11 = int_to_ptr.vmem [resolvable:$true] %s44_s11 }
   0xb   :  { %50 = dma.hbm_to_vmem [thread:$0]  %s43_s7, 1024, %s45_s11, [#allocation6], %s583_s26, %s583_s26, %s584_s27  }
   0xc   :  { %s57_s12 = sshll.u32 %s587_s0, 4  ;;  %s58_s12 = int_to_ptr.vmem [resolvable:$true] %s57_s12 }
   0xd   :  { %63 = dma.hbm_to_vmem [thread:$0]  %s56_s9, 512, %s58_s12, [#allocation9], %s583_s26, %s583_s26, %s584_s27  }
   0xe   :  { %574 = dma.done.wait [#allocation3], 128  }
   0xf   :  { %575 = vsyncadd [#allocation3], 4294967168 }
  0x10   :  { %576 = dma.done.wait [#allocation6], 2048  }
  0x11   :  { %577 = vsyncadd [#allocation6], 4294965248 }
  0x12   :  { %578 = dma.done.wait [#allocation9], 512  }
  0x13   :  { %579 = vsyncadd [#allocation9], 4294966784  ;;  %v631_v0 = vld [vmem:[#allocation5 + $0x18] sm:$0xff]  ;;  %vm100_vm0 = vcmask 261120   ;;  %v633_v1 = vld [vmem:[#allocation5 + $0x8] sm:$0xff]  ;;  %s588_s13 = smov [#allocation10]  }
  0x14   :  { %v635_v2 = vld [vmem:[#allocation2] sm:$0xff]  ;;  %v118_v3 = vmul.f32 %v631_v0, %v631_v0  ;;  %v116_v4 = vmul.f32 %v633_v1, %v633_v1  ;;  %v643_v6 = vld [vmem:[#allocation5 + $0x20] sm:$0xff]  ;;  %v645_v7 = vld [vmem:[#allocation5 + $0x10] sm:$0xff]  ;;  %s413_s14 = sshll.u32 %s588_s13, 4  ;;  %s415_s17 = sshll.u32 %s860_s5, 4  ;;  %s414_s14 = int_to_ptr.vmem [resolvable:$true] %s413_s14  ;;  %s416_s17 = int_to_ptr.hbm [resolvable:$true] %s415_s17 }
  0x15   :  { %v99_v5 = vmul.f32 %v635_v2, %v635_v2  ;;  %v650_v11 = vld [vmem:[#allocation5] sm:$0xff]  ;;  %v119_v12 = vmul.f32 %v643_v6, %v643_v6  ;;  %v117_v13 = vmul.f32 %v645_v7, %v645_v7  ;;  %v661_v18 = vld [vmem:[#allocation5 + $0x38] sm:$0xff]  ;;  %v663_v19 = vld [vmem:[#allocation5 + $0x30] sm:$0xff] }
  0x16   :  { %v132_v8 = vsel %vm100_vm0, %v118_v3, 0.0  ;;  %v126_v9 = vsel %vm100_vm0, %v116_v4, 0.0  ;;  %v115_v14 = vmul.f32 %v650_v11, %v650_v11  ;;  %v665_v20 = vld [vmem:[#allocation5 + $0x28] sm:$0xff]  ;;  %v122_v21 = vmul.f32 %v661_v18, %v661_v18 }
  0x17   :  { %v101_v10 = vsel %vm100_vm0, %v99_v5, 0.0  ;;  %133 = vadd.xlane.f32.xlu2 %v132_v8  ;;  %127 = vadd.xlane.f32.xlu1 %v126_v9  ;;  %v135_v15 = vsel %vm100_vm0, %v119_v12, 0.0  ;;  %v129_v16 = vsel %vm100_vm0, %v117_v13, 0.0  ;;  %v121_v22 = vmul.f32 %v663_v19, %v663_v19 }
  0x18   :  { %102 = vadd.xlane.f32.xlu0 %v101_v10  ;;  %v123_v17 = vsel %vm100_vm0, %v115_v14, 0.0  ;;  %v120_v23 = vmul.f32 %v665_v20, %v665_v20  ;;  %v144_v24 = vsel %vm100_vm0, %v122_v21, 0.0 }
  0x19   :  { %v141_v25 = vsel %vm100_vm0, %v121_v22, 0.0 }
  0x1a   :  { %v138_v26 = vsel %vm100_vm0, %v120_v23, 0.0 }
  0x1f   :  { %136 = vadd.xlane.f32.xlu2 %v135_v15  ;;  %130 = vadd.xlane.f32.xlu1 %v129_v16 }
  0x20   :  { %124 = vadd.xlane.f32.xlu0 %v123_v17 }
  0x27   :  { %145 = vadd.xlane.f32.xlu2 %v144_v24  ;;  %142 = vadd.xlane.f32.xlu1 %v141_v25 }
  0x28   :  { %139 = vadd.xlane.f32.xlu0 %v138_v26 }
  0x8a   :  { %v676_v27 = vpop.xlane.xlu2 %133  ;;  %v128_v28 = vpop.xlane.xlu1 %127 }
  0x8b   :  { %436 = vrsqrt.f32 %v676_v27  ;;  %v103_v29 = vpop.xlane.xlu0 %102  ;;  %vm183_vm1 = vweird.f32 %v676_v27  ;;  %vm163_vm2 = vweird.f32 %v128_v28 }
  0x8c   :  { %438 = vrsqrt.f32 %v128_v28  ;;  %vm110_vm4 = vweird.f32 %v103_v29 }
  0x8d   :  { %440 = vrsqrt.f32 %v103_v29 }
  0x91   :  { %v679_v30 = vpop.eup %436 }
  0x92   :  { %v681_v31 = vpop.eup %438  ;;  %v178_v32 = vmul.f32 %v679_v30, %v676_v27  ;;  %v685_v33 = vpop.xlane.xlu2 %136  ;;  %vm184_vm3 = vweird.f32 %v679_v30 }
  0x93   :  { %v687_v34 = vpop.xlane.xlu1 %130  ;;  %v441_v35 = vpop.eup %440  ;;  %v158_v36 = vmul.f32 %v681_v31, %v128_v28  ;;  %442 = vrsqrt.f32 %v685_v33  ;;  %vm164_vm5 = vweird.f32 %v681_v31  ;;  %vm193_vm7 = vweird.f32 %v685_v33 }
  0x94   :  { %v691_v37 = vpop.xlane.xlu0 %124  ;;  %v179_v38 = vmul.f32 %v679_v30, %v178_v32  ;;  %v105_v39 = vmul.f32 %v441_v35, %v103_v29  ;;  %444 = vrsqrt.f32 %v687_v34  ;;  %vm111_vm6 = vweird.f32 %v441_v35  ;;  %vm735_vm12 = vmor %vm163_vm2, %vm164_vm5 }
  0x95   :  { %v159_v40 = vmul.f32 %v681_v31, %v158_v36  ;;  %446 = vrsqrt.f32 %v691_v37  ;;  %vm173_vm8 = vweird.f32 %v687_v34  ;;  %vm153_vm9 = vweird.f32 %v691_v37  ;;  %vm112_vm10 = vmor %vm110_vm4, %vm111_vm6 }
  0x96   :  { %v180_v41 = vmul.f32 0.5, %v179_v38  ;;  %v106_v42 = vmul.f32 %v441_v35, %v105_v39  ;;  %vm756_vm2 = vmor %vm183_vm1, %vm184_vm3 }
  0x97   :  { %v160_v43 = vmul.f32 0.5, %v159_v40 }
  0x98   :  { %v107_v44 = vmul.f32 0.5, %v106_v42  ;;  %v181_v46 = vsub.f32 1.5, %v180_v41 }
  0x99   :  { %v698_v45 = vpop.eup %442  ;;  %v161_v47 = vsub.f32 1.5, %v160_v43 }
  0x9a   :  { %v701_v48 = vpop.eup %444  ;;  %v108_v49 = vsub.f32 1.5, %v107_v44  ;;  %v188_v50 = vmul.f32 %v698_v45, %v685_v33  ;;  %v706_v51 = vpop.xlane.xlu2 %145  ;;  %v725_v60 = vmul.f32 %v679_v30, %v181_v46  ;;  %vm194_vm11 = vweird.f32 %v698_v45 }
  0x9b   :  { %v708_v52 = vpop.xlane.xlu1 %142  ;;  %v710_v53 = vpop.eup %446  ;;  %v162_v54 = vmul.f32 %v681_v31, %v161_v47  ;;  %v168_v55 = vmul.f32 %v701_v48, %v687_v34  ;;  %448 = vrsqrt.f32 %v706_v51  ;;  %vm174_vm13 = vweird.f32 %v701_v48 }
  0x9c   :  { %v718_v56 = vpop.xlane.xlu0 %139  ;;  %v109_v57 = vmul.f32 %v441_v35, %v108_v49  ;;  %v189_v58 = vmul.f32 %v698_v45, %v188_v50  ;;  %v148_v59 = vmul.f32 %v710_v53, %v691_v37  ;;  %450 = vrsqrt.f32 %v708_v52  ;;  %vm175_vm4 = vmor %vm173_vm8, %vm174_vm13 }
  0x9d   :  { %v169_v61 = vmul.f32 %v701_v48, %v168_v55  ;;  %452 = vrsqrt.f32 %v718_v56  ;;  %v166_v9 = vsel %vm735_vm12, %v681_v31, %v162_v54  ;;  %vm154_vm14 = vweird.f32 %v710_v53  ;;  %vm195_vm8 = vmor %vm193_vm7, %vm194_vm11 }
  0x9e   :  { %v113_v63 = vsel %vm112_vm10, %v441_v35, %v109_v57  ;;  %v190_v3 = vmul.f32 0.5, %v189_v58  ;;  %v149_v4 = vmul.f32 %v710_v53, %v148_v59  ;;  %vm223_vm15 = vweird.f32 %v706_v51  ;;  %vm155_vm6 = vmor %vm153_vm9, %vm154_vm14 }
  0x9f   :  { %v742_v5 = vmul.f32 %v113_v63, %v635_v2  ;;  %v170_v8 = vmul.f32 0.5, %v169_v61  ;;  %v228_v15 = vmul.f32 %v166_v9, %v633_v1  ;;  %v186_v24 = vsel %vm756_vm2, %v679_v30, %v725_v60 }
  0xa0   :  { %v191_v10 = vsub.f32 1.5, %v190_v3  ;;  %v150_v12 = vmul.f32 0.5, %v149_v4  ;;  %vm203_vm3 = vweird.f32 %v718_v56  ;;  %vm213_vm5 = vweird.f32 %v708_v52 }
  0xa1   :  { %v750_v13 = vpop.eup %448  ;;  %v171_v14 = vsub.f32 1.5, %v170_v8  ;;  %v236_v16 = vrot.slane %v742_v5, 1  ;;  %v237_v17 = vrot.slane %v742_v5, 2  ;;  %v243_v23 = vperm.slane %v742_v5, 0 }
  0xa2   :  { %v151_v21 = vsub.f32 1.5, %v150_v12  ;;  %v218_v22 = vmul.f32 %v750_v13, %v706_v51  ;;  %v770_v25 = vpop.eup %450  ;;  %v192_v26 = vmul.f32 %v698_v45, %v191_v10  ;;  %vm224_vm1 = vweird.f32 %v750_v13 }
  0xa3   :  { %v172_v1 = vmul.f32 %v701_v48, %v171_v14  ;;  %v244_v27 = vperm.slane %v236_v16, 0  ;;  %v453_v28 = vpop.eup %452  ;;  %v208_v31 = vmul.f32 %v770_v25, %v708_v52  ;;  %v245_v32 = vperm.slane %v237_v17, 0  ;;  %vm811_vm9 = vmor %vm223_vm15, %vm224_vm1 }
  0xa4   :  { %v152_v29 = vmul.f32 %v710_v53, %v151_v21  ;;  %v219_v30 = vmul.f32 %v750_v13, %v218_v22  ;;  %v198_v35 = vmul.f32 %v453_v28, %v718_v56  ;;  %v239_v38 = vrot.slane %v742_v5, 4 }
  0xa5   :  { %v260_v36 = vmul.f32 %v244_v27, %v228_v15  ;;  %v176_v34 = vsel %vm175_vm4, %v701_v48, %v172_v1  ;;  %v209_v40 = vmul.f32 %v770_v25, %v208_v31  ;;  %v196_v46 = vsel %vm195_vm8, %v698_v45, %v192_v26  ;;  %v93_v26 = vld [vmem:[#allocation7 + $0x10] sm:$0xff]  ;;  %v91_v1 = vld [vmem:[#allocation7] sm:$0xff]  ;;  %v358_v27 = vld [vmem:[#allocation8 + $0x18] sm:$0xff] }
  0xa6   :  { %v220_v39 = vmul.f32 0.5, %v219_v30  ;;  %v229_v41 = vmul.f32 %v176_v34, %v645_v7  ;;  %v156_v37 = vsel %vm155_vm6, %v710_v53, %v152_v29  ;;  %v199_v42 = vmul.f32 %v453_v28, %v198_v35  ;;  %399 = vmatpush.msra.mxu0 %v358_v27  ;;  %v356_v35 = vld [vmem:[#allocation8 + $0x8] sm:$0xff] }
  0xa7   :  { %v270_v43 = vsel %vm100_vm0, %v260_v36, 0.0  ;;  %v227_v44 = vmul.f32 %v156_v37, %v650_v11  ;;  %v210_v48 = vmul.f32 0.5, %v209_v40  ;;  %v231_v33 = vmul.f32 %v196_v46, %v643_v6 }
  0xa8   :  { %v221_v47 = vsub.f32 1.5, %v220_v39  ;;  %271 = vadd.xlane.f32.xlu1 %v270_v43  ;;  %v261_v49 = vmul.f32 %v245_v32, %v229_v41  ;;  %vm214_vm7 = vweird.f32 %v770_v25  ;;  %v200_v50 = vmul.f32 0.5, %v199_v42  ;;  %v355_v39 = vld [vmem:[#allocation8] sm:$0xff] }
  0xa9   :  { %v259_v54 = vmul.f32 %v243_v23, %v227_v44  ;;  %v247_v7 = vperm.slane %v239_v38, 0  ;;  %v211_v55 = vsub.f32 1.5, %v210_v48  ;;  %v238_v11 = vrot.slane %v742_v5, 3  ;;  %vm215_vm12 = vmor %vm213_vm5, %vm214_vm7  ;;  %v95_v38 = vld [vmem:[#allocation7 + $0x20] sm:$0xff]  ;;  %v94_v48 = vld [vmem:[#allocation7 + $0x18] sm:$0xff] }
  0xaa   :  { %v222_v53 = vmul.f32 %v750_v13, %v221_v47  ;;  %v273_v57 = vsel %vm100_vm0, %v261_v49, 0.0  ;;  %v201_v6 = vsub.f32 1.5, %v200_v50  ;;  %vm204_vm10 = vweird.f32 %v453_v28  ;;  %v96_v50 = vld [vmem:[#allocation7 + $0x28] sm:$0xff] }
  0xab   :  { %274 = vadd.xlane.f32.xlu2 %v273_v57  ;;  %v267_v58 = vsel %vm100_vm0, %v259_v54, 0.0  ;;  %v263_v59 = vmul.f32 %v247_v7, %v231_v33  ;;  %v212_v60 = vmul.f32 %v770_v25, %v211_v55  ;;  %v246_v61 = vperm.slane %v238_v11, 0  ;;  %vm205_vm11 = vmor %vm203_vm3, %vm204_vm10 }
  0xac   :  { %268 = vadd.xlane.f32.xlu0 %v267_v58  ;;  %v240_v62 = vrot.slane %v742_v5, 5  ;;  %v226_v51 = vsel %vm811_vm9, %v750_v13, %v222_v53  ;;  %v202_v63 = vmul.f32 %v453_v28, %v201_v6  ;;  %v230_v3 = vmul.f32 %v186_v24, %v631_v0  ;;  %v92_v24 = vld [vmem:[#allocation7 + $0x8] sm:$0xff] }
  0xad   :  { %v242_v4 = vrot.slane %v742_v5, 7  ;;  %v279_v8 = vsel %vm100_vm0, %v263_v59, 0.0  ;;  %v234_v12 = vmul.f32 %v226_v51, %v661_v18  ;;  %v216_v2 = vsel %vm215_vm12, %v770_v25, %v212_v60  ;;  %v98_v59 = vld [vmem:[#allocation7 + $0x38] sm:$0xff] }
  0xae   :  { %v262_v9 = vmul.f32 %v246_v61, %v230_v3  ;;  %v206_v10 = vsel %vm205_vm11, %v453_v28, %v202_v63  ;;  %v248_v0 = vperm.slane %v240_v62, 0  ;;  %v241_v56 = vrot.slane %v742_v5, 6  ;;  %v357_v28 = vld [vmem:[#allocation8 + $0x10] sm:$0xff] }
  0xaf   :  { %v232_v13 = vmul.f32 %v206_v10, %v665_v20  ;;  %v250_v14 = vperm.slane %v242_v4, 0  ;;  %v233_v17 = vmul.f32 %v216_v2, %v663_v19  ;;  %400 = vmatpush.msra.mxu0 %v357_v28  ;;  %vm371_vm13 = vcmask 1041409  }
  0xb0   :  { %280 = vadd.xlane.f32.xlu1 %v279_v8  ;;  %v276_v16 = vsel %vm100_vm0, %v262_v9, 0.0  ;;  %v249_v18 = vperm.slane %v241_v56, 0  ;;  %vm373_vm14 = vcmask 1042434   ;;  %vm375_vm15 = vcmask 1043459  }
  0xb1   :  { %v264_v15 = vmul.f32 %v248_v0, %v232_v13  ;;  %v266_v52 = vmul.f32 %v250_v14, %v234_v12  ;;  %401 = vmatpush.msra.mxu0 %v356_v35  ;;  %v97_v13 = vld [vmem:[#allocation7 + $0x30] sm:$0xff]  ;;  %vm377_vm2 = vcmask 1044484   ;;  %vm379_vm1 = vcmask 1045509  }
  0xb2   :  { %v265_v20 = vmul.f32 %v249_v18, %v233_v17  ;;  %vm381_vm3 = vcmask 1046534   ;;  %vm383_vm4 = vcmask 1047559  }
  0xb3   :  { %v282_v21 = vsel %vm100_vm0, %v264_v15, 0.0  ;;  %v288_v22 = vsel %vm100_vm0, %v266_v52, 0.0  ;;  %402 = vmatpush.msra.mxu0 %v355_v39 }
  0xb4   :  { %277 = vadd.xlane.f32.xlu0 %v276_v16  ;;  %283 = vadd.xlane.f32.xlu2 %v282_v21  ;;  %v285_v23 = vsel %vm100_vm0, %v265_v20, 0.0 }
  0xb8   :  { %289 = vadd.xlane.f32.xlu1 %v288_v22 }
  0xbc   :  { %286 = vadd.xlane.f32.xlu0 %v285_v23 }
 0x11b   :  { %v272_v5 = vpop.xlane.xlu1 %271 }
 0x11c   :  { %v292_v25 = vmul.f32 %v272_v5, %v92_v24 }
 0x11e   :  { %v306_v19 = vsel %vm100_vm0, %v292_v25, 0.0  ;;  %v275_v29 = vpop.xlane.xlu2 %274 }
 0x11f   :  { %v307_v30 = vrot.slane %v306_v19, 4  ;;  %v293_v31 = vmul.f32 %v275_v29, %v93_v26  ;;  %v269_v32 = vpop.xlane.xlu0 %268 }
 0x120   :  { %v291_v36 = vmul.f32 %v269_v32, %v91_v1 }
 0x121   :  { %v313_v34 = vsel %vm100_vm0, %v293_v31, 0.0  ;;  %v308_v40 = vadd.f32 %v307_v30, %v306_v19 }
 0x122   :  { %v314_v41 = vrot.slane %v313_v34, 4  ;;  %v299_v37 = vsel %vm100_vm0, %v291_v36, 0.0 }
 0x123   :  { %v300_v42 = vrot.slane %v299_v37, 4  ;;  %v281_v43 = vpop.xlane.xlu1 %280  ;;  %v309_v49 = vrot.slane %v308_v40, 2 }
 0x124   :  { %v315_v44 = vadd.f32 %v314_v41, %v313_v34  ;;  %v295_v46 = vmul.f32 %v281_v43, %v95_v38 }
 0x125   :  { %v301_v47 = vadd.f32 %v300_v42, %v299_v37  ;;  %v310_v60 = vadd.f32 %v309_v49, %v308_v40 }
 0x126   :  { %v327_v33 = vsel %vm100_vm0, %v295_v46, 0.0  ;;  %v316_v54 = vrot.slane %v315_v44, 2 }
 0x127   :  { %v302_v7 = vrot.slane %v301_v47, 2  ;;  %v328_v53 = vrot.slane %v327_v33, 4  ;;  %v278_v55 = vpop.xlane.xlu0 %277  ;;  %v284_v57 = vpop.xlane.xlu2 %283  ;;  %v311_v0 = vrot.slane %v310_v60, 1 }
 0x128   :  { %v294_v11 = vmul.f32 %v278_v55, %v94_v48  ;;  %v296_v58 = vmul.f32 %v284_v57, %v96_v50  ;;  %v317_v62 = vadd.f32 %v316_v54, %v315_v44 }
 0x129   :  { %v303_v45 = vadd.f32 %v302_v7, %v301_v47  ;;  %v329_v6 = vadd.f32 %v328_v53, %v327_v33  ;;  %v312_v24 = vadd.f32 %v311_v0, %v310_v60  ;;  %v435_v33 = vld [vmem:[%s859_s4] ss:$0 sm:$0xff] }
 0x12a   :  { %v320_v61 = vsel %vm100_vm0, %v294_v11, 0.0  ;;  %v334_v51 = vsel %vm100_vm0, %v296_v58, 0.0  ;;  %v318_v56 = vrot.slane %v317_v62, 1 }
 0x12b   :  { %v321_v63 = vrot.slane %v320_v61, 4  ;;  %v290_v3 = vpop.xlane.xlu1 %289  ;;  %v304_v4 = vrot.slane %v303_v45, 1  ;;  %v335_v8 = vrot.slane %v334_v51, 4  ;;  %v330_v10 = vrot.slane %v329_v6, 2 }
 0x12c   :  { %v298_v9 = vmul.f32 %v290_v3, %v98_v59  ;;  %v319_v25 = vadd.f32 %v318_v56, %v317_v62 }
 0x12d   :  { %v322_v12 = vadd.f32 %v321_v63, %v320_v61  ;;  %v336_v2 = vadd.f32 %v335_v8, %v334_v51  ;;  %v305_v17 = vadd.f32 %v304_v4, %v303_v45  ;;  %v331_v22 = vadd.f32 %v330_v10, %v329_v6 }
 0x12e   :  { %v348_v14 = vsel %vm100_vm0, %v298_v9, 0.0 }
 0x12f   :  { %v323_v15 = vrot.slane %v322_v12, 2  ;;  %v349_v16 = vrot.slane %v348_v14, 4  ;;  %v287_v52 = vpop.xlane.xlu0 %286  ;;  %v337_v21 = vrot.slane %v336_v2, 2  ;;  %v372_v28 = vsel %vm371_vm13, %v312_v24, %v305_v17 }
 0x130   :  { %v297_v18 = vmul.f32 %v287_v52, %v97_v13  ;;  %v332_v29 = vrot.slane %v331_v22, 1  ;;  %v374_v36 = vsel %vm373_vm14, %v319_v25, %v372_v28 }
 0x131   :  { %v324_v20 = vadd.f32 %v323_v15, %v322_v12  ;;  %v350_v23 = vadd.f32 %v349_v16, %v348_v14  ;;  %v338_v19 = vadd.f32 %v337_v21, %v336_v2 }
 0x132   :  { %v341_v5 = vsel %vm100_vm0, %v297_v18, 0.0  ;;  %v333_v39 = vadd.f32 %v332_v29, %v331_v22 }
 0x133   :  { %v325_v26 = vrot.slane %v324_v20, 1  ;;  %v351_v1 = vrot.slane %v350_v23, 2  ;;  %v342_v27 = vrot.slane %v341_v5, 4  ;;  %v339_v34 = vrot.slane %v338_v19, 1 }
 0x135   :  { %v326_v30 = vadd.f32 %v325_v26, %v324_v20  ;;  %v343_v31 = vadd.f32 %v342_v27, %v341_v5  ;;  %v352_v32 = vadd.f32 %v351_v1, %v350_v23  ;;  %v340_v43 = vadd.f32 %v339_v34, %v338_v19 }
 0x137   :  { %v344_v35 = vrot.slane %v343_v31, 2  ;;  %v376_v38 = vsel %vm375_vm15, %v326_v30, %v374_v36  ;;  %v353_v41 = vrot.slane %v352_v32, 1 }
 0x138   :  { %v378_v42 = vsel %vm377_vm2, %v333_v39, %v376_v38 }
 0x139   :  { %v345_v40 = vadd.f32 %v344_v35, %v343_v31  ;;  %v354_v46 = vadd.f32 %v353_v41, %v352_v32  ;;  %v380_v47 = vsel %vm379_vm1, %v340_v43, %v378_v42 }
 0x13b   :  { %v346_v37 = vrot.slane %v345_v40, 1 }
 0x13d   :  { %v347_v44 = vadd.f32 %v346_v37, %v345_v40 }
 0x13f   :  { %v382_v48 = vsel %vm381_vm3, %v347_v44, %v380_v47 }
 0x140   :  { %v384_v49 = vsel %vm383_vm4, %v354_v46, %v382_v48 }
 0x141   :  { %427 = vmatmul.msk.f32.vlgmr.msra.gmra.mxu0 %vm100_vm0, %v384_v49 }
 0x1be   :  { %v404_v50 = vpop.f32.mrf.mxu0 }
 0x1bf   :  { %v405_v54 = vadd.f32 %v435_v33, %v404_v50 }
 0x1c1   :  { %407 = vst.msk [vmem:[#allocation10] sm:$0xff] %vm100_vm0, %v405_v54 }
 0x1c2   :  { %418 = dma.vmem_to_hbm [thread:$0]  %s414_s14, 128, %s416_s17, [#allocation4]  }
 0x1c3   :  { %580 = dma.done.wait [#allocation4], 128  }
 0x1c4   :  { %581 = vsyncadd [#allocation4], 4294967168 }
 0x1c5   :  { %423 = vsyncpa [#allocation3], 1 }
 0x1c6   :  { %424 = vsyncpa [#allocation6], 1 }
 0x1c7   :  { %425 = vsyncpa [#allocation9], 1 }
 0x1c8   :  { %426 = vsyncpa [#allocation4], 1 }

</bundles_post_ra>
